<compile_context>
chip_gen: v5e
topology: v5e:2x2
jax: 0.10.0
libtpu: 0.0.40
codegen_flags: <defaults>
</compile_context>

<pallas_src>
import jax
import jax.numpy as jnp
from jax import lax
from jax.experimental import pallas as pl
from jax.experimental.pallas import tpu as pltpu

LANE = 128       # lane width
SUB = 8          # sublane count
BBLK_MAX = 256   # max batch rows per grid step (MXU rows on v6e/v7x)


def _round_up(x, m):
    return ((x + m - 1) // m) * m


# ----------------------- one-time pltpu.roll direction probe -------------------
_ROLL_MATCHES_JNP = None


def _roll_matches_jnp_roll():
    """Probe (once) whether pltpu.roll follows jnp.roll semantics (result[i] = x[i-shift]).

    The packed-gate layout realigns gate blocks with lane rotations; probing the direction
    on the actual backend keeps the kernel correct under either rotation convention."""
    global _ROLL_MATCHES_JNP
    if _ROLL_MATCHES_JNP is None:
        def probe(x_ref, o_ref):
            o_ref[...] = pltpu.roll(x_ref[...], shift=1, axis=1)

        x = lax.broadcasted_iota(jnp.float32, (SUB, LANE), 1)
        out = pl.pallas_call(
            probe, out_shape=jax.ShapeDtypeStruct((SUB, LANE), jnp.float32))(x)
        _ROLL_MATCHES_JNP = bool(out[0, 0] == float(LANE - 1))
    return _ROLL_MATCHES_JNP


# ------------------------- fused LSTM + FC kernel ----------------------------
def make_stock_lstm_kernel(num_layers, T, H, Kp, Gp, BBLK, gate_shifts, zx_in_regs):
    """All layers + final FC in a single kernel invocation per batch block."""
    n_extra = num_layers - 1
    s_f, s_g, s_o = gate_shifts          # static lane rotations: gate block -> lanes [0:H)
    full_unroll = T <= 16

    def kernel(*refs):
        zx0_ref = refs[0]                              # (T, BBLK, Gp) layer-0 pre-activations
        w_hh0_ref = refs[1]                            # (Kp, Gp) bf16
        layer_refs = refs[2:2 + 3 * n_extra]           # (w_ih_t, w_hh_t, b) per layer >= 1
        fc_w_ref = refs[2 + 3 * n_extra]               # (Kp, Op) f32
        fc_b_ref = refs[3 + 3 * n_extra]               # (1, Op)  f32
        out_ref = refs[4 + 3 * n_extra]                # (BBLK, Op)
        seq_scr = refs[5 + 3 * n_extra]                # (T, BBLK, Kp) bf16 inter-layer h
        zx_scr = refs[6 + 3 * n_extra]                 # (T, BBLK, Gp) hoisted pre-activations

        def recurrence(get_z, w_hh_t, write_seq):
            """Serial time loop: only h @ W_hh^T + gate math remain per step."""

            def step(t, carry):
                h, c = carry
                z = get_z(t) + jnp.dot(h.astype(w_hh_t.dtype), w_hh_t,
                                       preferred_element_type=jnp.float32)
                # Packed gate order (PyTorch): i | f | g | o, each H lanes wide.
                sz = jax.nn.sigmoid(z)                               # i/f/o (g lanes unused)
                i_g = sz[:, :Kp]
                f_g = pltpu.roll(sz, shift=s_f, axis=1)[:, :Kp]
                o_g = pltpu.roll(sz, shift=s_o, axis=1)[:, :Kp]
                g_g = jnp.tanh(pltpu.roll(z, shift=s_g, axis=1)[:, :Kp])
                # Lanes >= H of i/f/g/o (hence of c,h) carry bounded garbage; every weight
                # row >= H is zero, so it never reaches real lanes/outputs.
                c_new = f_g * c + i_g * g_g
                h_new = o_g * jnp.tanh(c_new)
                if write_seq:
                    seq_scr[t] = h_new.astype(seq_scr.dtype)
                return h_new, c_new

            h0 = jnp.zeros((BBLK, Kp), jnp.float32)
            c0 = jnp.zeros((BBLK, Kp), jnp.float32)
            if zx_in_regs:
                carry = (h0, c0)
                for t in range(T):                     # static t: zx slices stay in vregs
                    carry = step(t, carry)
                return carry[0]
            h_last, _ = lax.fori_loop(0, T, step, (h0, c0),
                                      unroll=True if full_unroll else 8)
            return h_last

        # ---- layer 0: pre-activations precomputed in the wrapper (zx0_ref) ----
        if zx_in_regs:
            zx0 = zx0_ref[...]
            get_z0 = lambda t: zx0[t]
        else:
            get_z0 = lambda t: zx0_ref[t]
        h_last = recurrence(get_z0, w_hh0_ref[...], write_seq=num_layers > 1)

        # ---- layers 1..L-1: hoist x @ W_ih^T (+bias) out of the serial recurrence ----
        for li in range(n_extra):
            w_ih_t_ref, w_hh_t_ref, b_ref = layer_refs[3 * li:3 * li + 3]
            x_all = seq_scr[...].reshape(T * BBLK, Kp)                       # bf16
            zx = (jnp.dot(x_all, w_ih_t_ref[...],
                          preferred_element_type=jnp.float32)
                  + b_ref[...]).reshape(T, BBLK, Gp)
            if zx_in_regs:
                get_z = lambda t, zx=zx: zx[t]
            else:
                zx_scr[...] = zx.astype(zx_scr.dtype)
                get_z = lambda t: zx_scr[t].astype(jnp.float32)
            h_last = recurrence(get_z, w_hh_t_ref[...], write_seq=li < n_extra - 1)

        # ---- final FC on the last timestep only (lane-dense padded output) ----
        out_ref[...] = (jnp.dot(h_last, fc_w_ref[...],
                                preferred_element_type=jnp.float32)
                        + fc_b_ref[...]).astype(out_ref.dtype)

    return kernel


# --------------------------- one-time param packing ---------------------------
def pack_params(params, hidden_size, output_size):
    """Transpose + packed-gate lane layout + lane/sublane padding + bf16 casts, done ONCE.

    Gates (PyTorch order i,f,g,o) stay contiguous in lanes [0:4H) of a round_up(4H,128)-wide
    block.  Padded rows/lanes carry zero weights and zero bias, so with h0=c0=0 they never
    contaminate real lanes."""
    H = hidden_size
    Kp = _round_up(max(H, LANE), LANE)          # padded state width (matmul K / c,h lanes)
    Gp = _round_up(max(4 * H, LANE), LANE)      # packed 4-gate width (matmul N)
    O = output_size
    Op = _round_up(max(O, LANE), LANE)

    def pad_kxg(w_t):                           # (H, 4H) -> (Kp, Gp)
        return jnp.zeros((Kp, Gp), jnp.float32).at[:H, :4 * H].set(w_t)

    # Layer 0: raw transposed input weights + folded bias stay f32 for the wrapper-side
    # projection (K = input_size is tiny & MXU-hostile); only W_hh enters the kernel.
    w_ih0, w_hh0, b_ih0, b_hh0 = params["lstm"][0]
    packed = {
        "w_ih0_t": jnp.transpose(w_ih0).astype(jnp.float32),        # (Din, 4H)
        "b0": (b_ih0 + b_hh0).astype(jnp.float32),                  # (4H,)
        # bf16 recurrent weights, f32 accumulation (keep f32 for very long sequences).
        "w_hh0_t": pad_kxg(jnp.transpose(w_hh0)).astype(jnp.bfloat16),
    }

    layers = []
    for (w_ih, w_hh, b_ih, b_hh) in params["lstm"][1:]:
        layers.append((pad_kxg(jnp.transpose(w_ih)).astype(jnp.bfloat16),
                       pad_kxg(jnp.transpose(w_hh)).astype(jnp.bfloat16),
                       jnp.zeros((1, Gp), jnp.float32).at[0, :4 * H].set(b_ih + b_hh)))
    packed["layers"] = layers

    packed["fc_w_t"] = jnp.zeros((Kp, Op), jnp.float32).at[:H, :O].set(
        jnp.transpose(params["fc_w"]))
    packed["fc_b"] = jnp.zeros((1, Op), jnp.float32).at[0, :O].set(params["fc_b"])
    packed.update(H=H, Kp=Kp, Gp=Gp, O=O, Op=Op)
    return packed


# ------------------------------- Full forward ---------------------------------
def stock_lstm_forward(x, packed):
    """x: (B, T, input_size) batch-first (PyTorch convention) -> (B, output_size)."""
    H, Kp, Gp, O, Op = packed["H"], packed["Kp"], packed["Gp"], packed["O"], packed["Op"]
    layers = packed["layers"]
    num_layers = 1 + len(layers)

    B, T, Din = x.shape

    # Adaptive batch block: fill MXU rows, but keep the on-chip (T,BBLK,*) buffers within a
    # crude VMEM budget (v7x has only 64 MiB of VMEM).
    BBLK = min(_round_up(max(B, 1), SUB), BBLK_MAX)

    def _vmem_est(bblk):   # zx0 input (double-buffered, f32) + zx scratch + bf16 seq scratch
        return T * bblk * (3 * Gp * 4 + 2 * Kp)
    while BBLK > SUB and _vmem_est(BBLK) > 40 * 1024 * 1024:
        BBLK = _round_up(BBLK // 2, SUB)

    Bp = _round_up(B, BBLK)
    nb = Bp // BBLK

    # Layer-0 input projection hoisted into XLA: one dense (T*B,Din)x(Din,4H) GEMM with the
    # bias folded in, time-major, gate-packed and lane/sublane padded for the kernel.
    x_tm = jnp.transpose(x.astype(jnp.float32), (1, 0, 2))                # (T, B, Din)
    zx0 = jnp.dot(x_tm.reshape(T * B, Din), packed["w_ih0_t"]) + packed["b0"]
    zx0 = jnp.pad(zx0.reshape(T, B, 4 * H),
                  ((0, 0), (0, Bp - B), (0, Gp - 4 * H)))                 # (T, Bp, Gp)

    zx_bytes = T * BBLK * Gp * 4
    zx_in_regs = (T <= 16) and (zx_bytes <= 64 * 1024)                    # tiny -> keep in vregs
    zx_scr_dtype = jnp.float32 if zx_bytes <= (4 << 20) else jnp.bfloat16

    # Lane rotations that bring each gate block (f,g,o) to lanes [0:H), matching pltpu.roll's
    # probed convention.
    if _roll_matches_jnp_roll():
        gate_shifts = ((Gp - H) % Gp, (Gp - 2 * H) % Gp, (Gp - 3 * H) % Gp)
    else:
        gate_shifts = (H, 2 * H, 3 * H)

    kernel = make_stock_lstm_kernel(num_layers, T, H, Kp, Gp, BBLK, gate_shifts, zx_in_regs)

    # NOTE: all weight/bias inputs use constant index maps; at large hidden sizes on v7x
    # they could be single-buffered (pipeline_mode=pl.Buffered(1)) or streamed over a
    # per-layer grid axis — not needed at these sizes.
    in_arrays = [zx0, packed["w_hh0_t"]]
    in_specs = [pl.BlockSpec((T, BBLK, Gp), lambda b: (0, b, 0)),
                pl.BlockSpec(packed["w_hh0_t"].shape, lambda b: (0, 0))]
    for (w_ih_t, w_hh_t, bias) in layers:
        for arr in (w_ih_t, w_hh_t, bias):
            in_arrays.append(arr)
            in_specs.append(pl.BlockSpec(arr.shape, lambda b: (0, 0)))
    for arr in (packed["fc_w_t"], packed["fc_b"]):
        in_arrays.append(arr)
        in_specs.append(pl.BlockSpec(arr.shape, lambda b: (0, 0)))

    out = pl.pallas_call(
        kernel,
        out_shape=jax.ShapeDtypeStruct((Bp, Op), jnp.float32),
        grid_spec=pltpu.PrefetchScalarGridSpec(
            num_scalar_prefetch=0,
            grid=(nb,),
            in_specs=in_specs,
            out_specs=pl.BlockSpec((BBLK, Op), lambda b: (b, 0)),
            scratch_shapes=[
                pltpu.VMEM((T, BBLK, Kp), jnp.bfloat16),    # inter-layer activations (on-chip)
                pltpu.VMEM((T, BBLK, Gp), zx_scr_dtype),    # hoisted pre-activations
            ],
        ),
        compiler_params=pltpu.CompilerParams(
            dimension_semantics=("parallel",),              # v7x: batch blocks across 2 TCs
            vmem_limit_bytes=48 * 1024 * 1024,              # headroom inside v7x's 64 MiB
        ),
    )(*in_arrays)

    return out[:B, :O]


# --------------------------- Deterministic parameters --------------------------
def init_params(key, input_size, hidden_size, num_layers, output_size):
    # PyTorch default init: U(-1/sqrt(hidden), 1/sqrt(hidden)).
    k = 1.0 / jnp.sqrt(jnp.float32(hidden_size))
    params = {"lstm": []}
    for layer in range(num_layers):
        d_in = input_size if layer == 0 else hidden_size
        key, k1, k2, k3, k4 = jax.random.split(key, 5)
        w_ih = jax.random.uniform(k1, (4 * hidden_size, d_in), jnp.float32, -k, k)
        w_hh = jax.random.uniform(k2, (4 * hidden_size, hidden_size), jnp.float32, -k, k)
        b_ih = jax.random.uniform(k3, (4 * hidden_size,), jnp.float32, -k, k)
        b_hh = jax.random.uniform(k4, (4 * hidden_size,), jnp.float32, -k, k)
        params["lstm"].append((w_ih, w_hh, b_ih, b_hh))
    key, k5, k6 = jax.random.split(key, 3)
    params["fc_w"] = jax.random.uniform(k5, (output_size, hidden_size), jnp.float32, -k, k)
    params["fc_b"] = jax.random.uniform(k6, (output_size,), jnp.float32, -k, k)
    return params


# ------------------------------- pure-JAX reference ----------------------------
def reference_forward(x, params):
    h_seq = x.astype(jnp.float32)
    B, T, _ = x.shape
    for (w_ih, w_hh, b_ih, b_hh) in params["lstm"]:
        H = w_hh.shape[1]
        h = jnp.zeros((B, H), jnp.float32)
        c = jnp.zeros((B, H), jnp.float32)
        outs = []
        for t in range(T):
            z = h_seq[:, t, :] @ w_ih.T + h @ w_hh.T + b_ih + b_hh
            i = jax.nn.sigmoid(z[:, 0 * H:1 * H])
            f = jax.nn.sigmoid(z[:, 1 * H:2 * H])
            g = jnp.tanh(z[:, 2 * H:3 * H])
            o = jax.nn.sigmoid(z[:, 3 * H:4 * H])
            c = f * c + i * g
            h = o * jnp.tanh(c)
            outs.append(h)
        h_seq = jnp.stack(outs, axis=1)
    return h_seq[:, -1, :] @ params["fc_w"].T + params["fc_b"]


if __name__ == "__main__":
    input_size, hidden_size, num_layers, output_size = 4, 32, 2, 1
    batch, seq = 2, 8

    key = jax.random.PRNGKey(0)
    key, xk = jax.random.split(key)
    x = jax.random.normal(xk, (batch, seq, input_size), jnp.float32)

    params = init_params(key, input_size, hidden_size, num_layers, output_size)
    packed = pack_params(params, hidden_size, output_size)

    out = stock_lstm_forward(x, packed)
    jax.block_until_ready(out)
    assert out.shape == (batch, output_size)

    ref = reference_forward(x, params)
    err = float(jnp.max(jnp.abs(out - ref)))
    assert err < 5e-2, f"max abs error vs f32 reference too large: {err}"

    print("KERNEL_OK")
</pallas_src>

<mosaic_0001>
module attributes {stable_mosaic.version = 11 : i64} {
  func.func @probe(%arg0: memref<8x128xf32, #tpu.memory_space<vmem>>, %arg1: memref<8x128xf32, #tpu.memory_space<vmem>>) attributes {dimension_semantics = [], scalar_prefetch = 0 : i64, scratch_operands = 0 : i64, tpu.core_type = #tpu.core_type<tc>} {
    %c0 = arith.constant 0 : index
    %c0_0 = arith.constant 0 : index
    %0 = vector.load %arg0[%c0, %c0_0] : memref<8x128xf32, #tpu.memory_space<vmem>>, vector<8x128xf32>
    %c1_i32 = arith.constant 1 : i32
    %1 = tpu.dynamic_rotate %0 by %c1_i32 dim 1 : vector<8x128xf32>, i32 -> vector<8x128xf32>
    %c0_1 = arith.constant 0 : index
    %c0_2 = arith.constant 0 : index
    %2 = vector.load %arg1[%c0_1, %c0_2] : memref<8x128xf32, #tpu.memory_space<vmem>>, vector<8x128xf32>
    tpu.vector_store %arg1[%c0_1, %c0_2], %1 {strides = array<i32>} : memref<8x128xf32, #tpu.memory_space<vmem>>, vector<8x128xf32>,
    return
  }
}

</mosaic_0001>

<bundles_post_ra>
// kernel: tpu_custom_call.1
= control target key start
LH: loop header
LB: loop body
LE: loop exit
PB: predicated region body
PF: predicated region fallthrough
CT: control target
= control target key end

     0   :  { %6 = vsyncpa [#allocation3], 0  ;;  %s118_s0 = inlined_call_operand.hbm [shape: f32[8,128], index: 0, kind: input, shape index: {}]   ;;  %s119_s1 = inlined_call_operand.hbm [shape: f32[8,128], index: 1, kind: output, shape index: {}]  }
   0x1   :  { %7 = vsyncpa [#allocation4], 0  ;;  %s13_s8 = sshll.u32 %s118_s0, 4  ;;  %s99_s9 = smov [#allocation2]   ;;  %s14_s8 = int_to_ptr.hbm [resolvable:$true] %s13_s8 }
   0x2   :  { %s15_s10 = sshll.u32 %s99_s9, 4  ;;  %s16_s10 = int_to_ptr.vmem [resolvable:$true] %s15_s10 }
   0x3   :  { %18 = dma.hbm_to_vmem [thread:$0]  %s14_s8, 128, %s16_s10, [#allocation3]  }
   0x4   :  { %95 = dma.done.wait [#allocation3], 128  }
   0x5   :  { %96 = vsyncadd [#allocation3], 4294967168  ;;  %v23_v0 = vld [vmem:[#allocation2] sm:$0xff]  ;;  %s100_s11 = smov 1   ;;  %s101_s12 = smov [#allocation5]  }
   0x6   :  { %24 = vrot.lane.b32.xlu0 %v23_v0, %s100_s11  ;;  %s32_s13 = sshll.u32 %s101_s12, 4  ;;  %s34_s16 = sshll.u32 %s119_s1, 4  ;;  %s33_s13 = int_to_ptr.vmem [resolvable:$true] %s32_s13  ;;  %s35_s16 = int_to_ptr.hbm [resolvable:$true] %s34_s16 }
  0x78   :  { %v25_v1 = vpop.permute.xlu0 %24 }
  0x79   :  { %26 = vst [vmem:[#allocation5] sm:$0xff] %v25_v1 }
  0x7a   :  { %37 = dma.vmem_to_hbm [thread:$0]  %s33_s13, 128, %s35_s16, [#allocation4]  }
  0x7b   :  { %97 = dma.done.wait [#allocation4], 128  }
  0x7c   :  { %98 = vsyncadd [#allocation4], 4294967168 }
  0x7d   :  { %42 = vsyncpa [#allocation3], 1 }
  0x7e   :  { %43 = vsyncpa [#allocation4], 1 }

</bundles_post_ra>
